<compile_context>
chip_gen: v6e
topology: v6e:2x2x1
jax: 0.10.0
libtpu: 0.0.40
codegen_flags: <defaults>
</compile_context>

<pallas_src>
import functools

import jax
import jax.numpy as jnp
from jax import lax
from jax.experimental import pallas as pl
from jax.experimental.pallas import tpu as pltpu

_BINS = 10


def _edwkl_tile_kernel(pt_ref, pe_ref, o_ref, *, n_valid, tile_n, needs_mask):
    """One (10, TILE_N) tile -> one partial sum of `term` over its valid lanes."""
    p_t = pt_ref[...]                      # (10, TILE_N) f32
    p_e = pe_ref[...]                      # (10, TILE_N) f32

    def k2_and_std_k3(p):
        # K1, K2 of p (reductions over the 10 bins = sublane axis 0).
        mean = jnp.mean(p, axis=0, keepdims=True)            # (1, T)
        d = p - mean
        d2 = d * d
        u1 = jnp.mean(d, axis=0, keepdims=True)
        u2 = jnp.mean(d2, axis=0, keepdims=True)
        K1 = u1
        K2 = u2 - u1 * u1
        # Standardize exactly like the module: (p - K1) * sqrt(1/K2).
        x = (p - K1) * lax.rsqrt(K2)
        # Third cumulant of the standardized distribution (the only live one).
        xm = jnp.mean(x, axis=0, keepdims=True)
        e = x - xm
        e2 = e * e
        e3 = e2 * e
        v1 = jnp.mean(e, axis=0, keepdims=True)
        v2 = jnp.mean(e2, axis=0, keepdims=True)
        v3 = jnp.mean(e3, axis=0, keepdims=True)
        K3s = v3 - 3.0 * v2 * v1 + 2.0 * v1 * v1 * v1
        return K2, K3s

    KX2, KX13 = k2_and_std_k3(p_e)
    KY2, KY13 = k2_and_std_k3(p_t)

    # Only the first term of each KL is live in the original forward:
    #   KL1 = (1/12) KX13^2 / KX2^2,  KL2 = (1/12) KY13^2 / KY2^2
    # term = -log(KL1)/2 - log(KL2)/2 = -0.5 * log(KL1 * KL2)
    #      = -0.5 * log( (1/144) * (KX13*KY13)^2 / (KX2*KY2)^2 )
    # -> one reciprocal + one log per sample on the EUP.
    num = KX13 * KY13
    den = KX2 * KY2
    prod = (1.0 / 144.0) * (num * num) * pl.reciprocal(den * den, approx=False)
    term = -0.5 * jnp.log(prod)                              # (1, TILE_N)

    if needs_mask:
        i = pl.program_id(0)
        col = lax.broadcasted_iota(jnp.int32, (1, tile_n), 1) + i * tile_n
        term = jnp.where(col < n_valid, term, 0.0)

    # One partial sum per tile; combined (and inverted) outside the kernel so
    # the grid axis stays fully "parallel".
    o_ref[...] = jnp.sum(term, axis=1, keepdims=True).reshape(1, 1, 1)


def edwkl_loss(p_target, p_estimate, *, tile_n=4096):
    """Pallas implementation of EDWKLLoss.forward. Returns a scalar f32."""
    pt = jnp.reshape(p_target, (-1, _BINS)).astype(jnp.float32)
    pe = jnp.reshape(p_estimate, (-1, _BINS)).astype(jnp.float32)
    assert pt.shape == pe.shape
    n = pt.shape[0]
    assert n >= 1

    # Lane-dense layout: bins on sublanes, samples on lanes (layout plumbing
    # done by XLA outside the kernel).
    pt_t = pt.T                                              # (10, N)
    pe_t = pe.T

    # Lane-axis tile: multiple of 128, at least 128.
    tile_n = max(128, (int(tile_n) + 127) // 128 * 128)
    num_tiles = pl.cdiv(n, tile_n)
    needs_mask = (n % tile_n) != 0

    kernel = functools.partial(
        _edwkl_tile_kernel, n_valid=n, tile_n=tile_n, needs_mask=needs_mask)

    partials = pl.pallas_call(
        kernel,
        out_shape=jax.ShapeDtypeStruct((num_tiles, 1, 1), jnp.float32),
        grid_spec=pltpu.PrefetchScalarGridSpec(
            num_scalar_prefetch=0,
            grid=(num_tiles,),
            in_specs=[
                pl.BlockSpec((_BINS, tile_n), lambda i: (0, i)),
                pl.BlockSpec((_BINS, tile_n), lambda i: (0, i)),
            ],
            out_specs=pl.BlockSpec((1, 1, 1), lambda i: (i, 0, 0)),
        ),
        compiler_params=pltpu.CompilerParams(
            dimension_semantics=("parallel",),
        ),
    )(pt_t, pe_t)

    # 1 / mean(term) == n / sum(term); tiny combine done by XLA.
    total = jnp.sum(partials[:, 0, 0])
    return jnp.float32(n) / total


def _edwkl_loss_ref(p_target, p_estimate):
    """Pure-JAX reference mirroring the PyTorch forward (row-major layout)."""
    pt = jnp.reshape(p_target, (-1, _BINS)).astype(jnp.float32)
    pe = jnp.reshape(p_estimate, (-1, _BINS)).astype(jnp.float32)

    def calcK(p):
        pm = jnp.mean(p, axis=1, keepdims=True)
        d = p - pm
        u1 = jnp.mean(d, axis=1, keepdims=True)
        u2 = jnp.mean(d * d, axis=1, keepdims=True)
        u3 = jnp.mean(d * d * d, axis=1, keepdims=True)
        K1 = u1
        K2 = u2 - u1 * u1
        K3 = u3 - 3.0 * u2 * u1 + 2.0 * u1 * u1 * u1
        return K1, K2, K3

    KX1, KX2, _ = calcK(pe)
    X1 = (pe - KX1) * jnp.sqrt(1.0 / KX2)
    _, _, KX13 = calcK(X1)
    KY1, KY2, _ = calcK(pt)
    Y1 = (pt - KY1) * jnp.sqrt(1.0 / KY2)
    _, _, KY13 = calcK(Y1)
    KL1 = (1.0 / 12.0) * KX13 * KX13 / KX2 / KX2
    KL2 = (1.0 / 12.0) * KY13 * KY13 / KY2 / KY2
    return 1.0 / jnp.mean(-jnp.log(KL1) / 2.0 - jnp.log(KL2) / 2.0)


if __name__ == "__main__":
    key = jax.random.PRNGKey(0)
    k1, k2 = jax.random.split(key)
    # 1000 samples of 10-bin distributions (positive, sum to 1), consistent
    # with the module's view(-1, 10). Small, but with tile_n=512 it exercises
    # a 2-step grid with a ragged, masked final tile (1000 = 512 + 488).
    n = 1000
    p_target = jax.nn.softmax(
        jax.random.normal(k1, (n, _BINS), dtype=jnp.float32), axis=-1)
    p_estimate = jax.nn.softmax(
        jax.random.normal(k2, (n, _BINS), dtype=jnp.float32), axis=-1)

    loss = edwkl_loss(p_target, p_estimate, tile_n=512)
    loss = jax.block_until_ready(loss)

    ref = _edwkl_loss_ref(p_target, p_estimate)
    assert jnp.isfinite(loss), "kernel produced non-finite loss"
    assert jnp.allclose(loss, ref, rtol=1e-4, atol=1e-5), (loss, ref)

    print("KERNEL_OK")
</pallas_src>

<mosaic_0001>
module attributes {stable_mosaic.version = 11 : i64} {
  func.func @_edwkl_tile_kernel(%arg0: i32, %arg1: memref<10x512xf32, #tpu.memory_space<vmem>>, %arg2: memref<10x512xf32, #tpu.memory_space<vmem>>, %arg3: memref<1x1x1xf32, #tpu.memory_space<vmem>>) attributes {dimension_semantics = [#tpu.dimension_semantics<parallel>], iteration_bounds = array<i64: 2>, scalar_prefetch = 0 : i64, scratch_operands = 0 : i64, tpu.core_type = #tpu.core_type<tc>, window_params = [{transform_indices = @transform_0, window_bounds = array<i64: 10, 512>}, {transform_indices = @transform_1, window_bounds = array<i64: 10, 512>}, {transform_indices = @transform_2, window_bounds = array<i64: 1, 1, 1>}]} {
    %c0 = arith.constant 0 : index
    %c0_0 = arith.constant 0 : index
    %0 = vector.load %arg1[%c0, %c0_0] : memref<10x512xf32, #tpu.memory_space<vmem>>, vector<10x512xf32>
    %c0_1 = arith.constant 0 : index
    %c0_2 = arith.constant 0 : index
    %1 = vector.load %arg2[%c0_1, %c0_2] : memref<10x512xf32, #tpu.memory_space<vmem>>, vector<10x512xf32>
    %cst = arith.constant dense<0.000000e+00> : vector<512xf32>
    %2 = vector.multi_reduction <add>, %1, %cst [0] : vector<10x512xf32> to vector<512xf32>
    %3 = vector.shape_cast %2 : vector<512xf32> to vector<1x512xf32>
    %cst_3 = arith.constant 1.000000e+01 : f32
    %4 = vector.broadcast %cst_3 : f32 to vector<1x512xf32>
    %5 = arith.divf %3, %4 : vector<1x512xf32>
    %6 = vector.broadcast %5 : vector<1x512xf32> to vector<10x512xf32>
    %7 = arith.subf %1, %6 : vector<10x512xf32>
    %8 = arith.mulf %7, %7 : vector<10x512xf32>
    %cst_4 = arith.constant dense<0.000000e+00> : vector<512xf32>
    %9 = vector.multi_reduction <add>, %7, %cst_4 [0] : vector<10x512xf32> to vector<512xf32>
    %10 = vector.shape_cast %9 : vector<512xf32> to vector<1x512xf32>
    %cst_5 = arith.constant 1.000000e+01 : f32
    %11 = vector.broadcast %cst_5 : f32 to vector<1x512xf32>
    %12 = arith.divf %10, %11 : vector<1x512xf32>
    %cst_6 = arith.constant dense<0.000000e+00> : vector<512xf32>
    %13 = vector.multi_reduction <add>, %8, %cst_6 [0] : vector<10x512xf32> to vector<512xf32>
    %14 = vector.shape_cast %13 : vector<512xf32> to vector<1x512xf32>
    %cst_7 = arith.constant 1.000000e+01 : f32
    %15 = vector.broadcast %cst_7 : f32 to vector<1x512xf32>
    %16 = arith.divf %14, %15 : vector<1x512xf32>
    %17 = arith.mulf %12, %12 : vector<1x512xf32>
    %18 = arith.subf %16, %17 : vector<1x512xf32>
    %19 = vector.broadcast %12 : vector<1x512xf32> to vector<10x512xf32>
    %20 = arith.subf %1, %19 : vector<10x512xf32>
    %21 = math.rsqrt %18 : vector<1x512xf32>
    %22 = vector.broadcast %21 : vector<1x512xf32> to vector<10x512xf32>
    %23 = arith.mulf %20, %22 : vector<10x512xf32>
    %cst_8 = arith.constant dense<0.000000e+00> : vector<512xf32>
    %24 = vector.multi_reduction <add>, %23, %cst_8 [0] : vector<10x512xf32> to vector<512xf32>
    %25 = vector.shape_cast %24 : vector<512xf32> to vector<1x512xf32>
    %cst_9 = arith.constant 1.000000e+01 : f32
    %26 = vector.broadcast %cst_9 : f32 to vector<1x512xf32>
    %27 = arith.divf %25, %26 : vector<1x512xf32>
    %28 = vector.broadcast %27 : vector<1x512xf32> to vector<10x512xf32>
    %29 = arith.subf %23, %28 : vector<10x512xf32>
    %30 = arith.mulf %29, %29 : vector<10x512xf32>
    %31 = arith.mulf %30, %29 : vector<10x512xf32>
    %cst_10 = arith.constant dense<0.000000e+00> : vector<512xf32>
    %32 = vector.multi_reduction <add>, %29, %cst_10 [0] : vector<10x512xf32> to vector<512xf32>
    %33 = vector.shape_cast %32 : vector<512xf32> to vector<1x512xf32>
    %cst_11 = arith.constant 1.000000e+01 : f32
    %34 = vector.broadcast %cst_11 : f32 to vector<1x512xf32>
    %35 = arith.divf %33, %34 : vector<1x512xf32>
    %cst_12 = arith.constant dense<0.000000e+00> : vector<512xf32>
    %36 = vector.multi_reduction <add>, %30, %cst_12 [0] : vector<10x512xf32> to vector<512xf32>
    %37 = vector.shape_cast %36 : vector<512xf32> to vector<1x512xf32>
    %cst_13 = arith.constant 1.000000e+01 : f32
    %38 = vector.broadcast %cst_13 : f32 to vector<1x512xf32>
    %39 = arith.divf %37, %38 : vector<1x512xf32>
    %cst_14 = arith.constant dense<0.000000e+00> : vector<512xf32>
    %40 = vector.multi_reduction <add>, %31, %cst_14 [0] : vector<10x512xf32> to vector<512xf32>
    %41 = vector.shape_cast %40 : vector<512xf32> to vector<1x512xf32>
    %cst_15 = arith.constant 1.000000e+01 : f32
    %42 = vector.broadcast %cst_15 : f32 to vector<1x512xf32>
    %43 = arith.divf %41, %42 : vector<1x512xf32>
    %cst_16 = arith.constant 3.000000e+00 : f32
    %44 = vector.broadcast %cst_16 : f32 to vector<1x512xf32>
    %45 = arith.mulf %44, %39 : vector<1x512xf32>
    %46 = arith.mulf %45, %35 : vector<1x512xf32>
    %47 = arith.subf %43, %46 : vector<1x512xf32>
    %cst_17 = arith.constant 2.000000e+00 : f32
    %48 = vector.broadcast %cst_17 : f32 to vector<1x512xf32>
    %49 = arith.mulf %48, %35 : vector<1x512xf32>
    %50 = arith.mulf %49, %35 : vector<1x512xf32>
    %51 = arith.mulf %50, %35 : vector<1x512xf32>
    %52 = arith.addf %47, %51 : vector<1x512xf32>
    %cst_18 = arith.constant dense<0.000000e+00> : vector<512xf32>
    %53 = vector.multi_reduction <add>, %0, %cst_18 [0] : vector<10x512xf32> to vector<512xf32>
    %54 = vector.shape_cast %53 : vector<512xf32> to vector<1x512xf32>
    %cst_19 = arith.constant 1.000000e+01 : f32
    %55 = vector.broadcast %cst_19 : f32 to vector<1x512xf32>
    %56 = arith.divf %54, %55 : vector<1x512xf32>
    %57 = vector.broadcast %56 : vector<1x512xf32> to vector<10x512xf32>
    %58 = arith.subf %0, %57 : vector<10x512xf32>
    %59 = arith.mulf %58, %58 : vector<10x512xf32>
    %cst_20 = arith.constant dense<0.000000e+00> : vector<512xf32>
    %60 = vector.multi_reduction <add>, %58, %cst_20 [0] : vector<10x512xf32> to vector<512xf32>
    %61 = vector.shape_cast %60 : vector<512xf32> to vector<1x512xf32>
    %cst_21 = arith.constant 1.000000e+01 : f32
    %62 = vector.broadcast %cst_21 : f32 to vector<1x512xf32>
    %63 = arith.divf %61, %62 : vector<1x512xf32>
    %cst_22 = arith.constant dense<0.000000e+00> : vector<512xf32>
    %64 = vector.multi_reduction <add>, %59, %cst_22 [0] : vector<10x512xf32> to vector<512xf32>
    %65 = vector.shape_cast %64 : vector<512xf32> to vector<1x512xf32>
    %cst_23 = arith.constant 1.000000e+01 : f32
    %66 = vector.broadcast %cst_23 : f32 to vector<1x512xf32>
    %67 = arith.divf %65, %66 : vector<1x512xf32>
    %68 = arith.mulf %63, %63 : vector<1x512xf32>
    %69 = arith.subf %67, %68 : vector<1x512xf32>
    %70 = vector.broadcast %63 : vector<1x512xf32> to vector<10x512xf32>
    %71 = arith.subf %0, %70 : vector<10x512xf32>
    %72 = math.rsqrt %69 : vector<1x512xf32>
    %73 = vector.broadcast %72 : vector<1x512xf32> to vector<10x512xf32>
    %74 = arith.mulf %71, %73 : vector<10x512xf32>
    %cst_24 = arith.constant dense<0.000000e+00> : vector<512xf32>
    %75 = vector.multi_reduction <add>, %74, %cst_24 [0] : vector<10x512xf32> to vector<512xf32>
    %76 = vector.shape_cast %75 : vector<512xf32> to vector<1x512xf32>
    %cst_25 = arith.constant 1.000000e+01 : f32
    %77 = vector.broadcast %cst_25 : f32 to vector<1x512xf32>
    %78 = arith.divf %76, %77 : vector<1x512xf32>
    %79 = vector.broadcast %78 : vector<1x512xf32> to vector<10x512xf32>
    %80 = arith.subf %74, %79 : vector<10x512xf32>
    %81 = arith.mulf %80, %80 : vector<10x512xf32>
    %82 = arith.mulf %81, %80 : vector<10x512xf32>
    %cst_26 = arith.constant dense<0.000000e+00> : vector<512xf32>
    %83 = vector.multi_reduction <add>, %80, %cst_26 [0] : vector<10x512xf32> to vector<512xf32>
    %84 = vector.shape_cast %83 : vector<512xf32> to vector<1x512xf32>
    %cst_27 = arith.constant 1.000000e+01 : f32
    %85 = vector.broadcast %cst_27 : f32 to vector<1x512xf32>
    %86 = arith.divf %84, %85 : vector<1x512xf32>
    %cst_28 = arith.constant dense<0.000000e+00> : vector<512xf32>
    %87 = vector.multi_reduction <add>, %81, %cst_28 [0] : vector<10x512xf32> to vector<512xf32>
    %88 = vector.shape_cast %87 : vector<512xf32> to vector<1x512xf32>
    %cst_29 = arith.constant 1.000000e+01 : f32
    %89 = vector.broadcast %cst_29 : f32 to vector<1x512xf32>
    %90 = arith.divf %88, %89 : vector<1x512xf32>
    %cst_30 = arith.constant dense<0.000000e+00> : vector<512xf32>
    %91 = vector.multi_reduction <add>, %82, %cst_30 [0] : vector<10x512xf32> to vector<512xf32>
    %92 = vector.shape_cast %91 : vector<512xf32> to vector<1x512xf32>
    %cst_31 = arith.constant 1.000000e+01 : f32
    %93 = vector.broadcast %cst_31 : f32 to vector<1x512xf32>
    %94 = arith.divf %92, %93 : vector<1x512xf32>
    %cst_32 = arith.constant 3.000000e+00 : f32
    %95 = vector.broadcast %cst_32 : f32 to vector<1x512xf32>
    %96 = arith.mulf %95, %90 : vector<1x512xf32>
    %97 = arith.mulf %96, %86 : vector<1x512xf32>
    %98 = arith.subf %94, %97 : vector<1x512xf32>
    %cst_33 = arith.constant 2.000000e+00 : f32
    %99 = vector.broadcast %cst_33 : f32 to vector<1x512xf32>
    %100 = arith.mulf %99, %86 : vector<1x512xf32>
    %101 = arith.mulf %100, %86 : vector<1x512xf32>
    %102 = arith.mulf %101, %86 : vector<1x512xf32>
    %103 = arith.addf %98, %102 : vector<1x512xf32>
    %104 = arith.mulf %52, %103 : vector<1x512xf32>
    %105 = arith.mulf %18, %69 : vector<1x512xf32>
    %106 = arith.mulf %104, %104 : vector<1x512xf32>
    %cst_34 = arith.constant 0.0069444445 : f32
    %107 = vector.broadcast %cst_34 : f32 to vector<1x512xf32>
    %108 = arith.mulf %107, %106 : vector<1x512xf32>
    %109 = arith.mulf %105, %105 : vector<1x512xf32>
    %110 = tpu.reciprocal %109 : vector<1x512xf32> -> vector<1x512xf32>
    %111 = arith.mulf %108, %110 : vector<1x512xf32>
    %112 = math.log %111 : vector<1x512xf32>
    %cst_35 = arith.constant -5.000000e-01 : f32
    %113 = vector.broadcast %cst_35 : f32 to vector<1x512xf32>
    %114 = arith.mulf %113, %112 : vector<1x512xf32>
    %115 = tpu.iota {dimensions = array<i32: 1>} : vector<1x512xi32>
    %c512_i32 = arith.constant 512 : i32
    %116 = arith.muli %arg0, %c512_i32 : i32
    %117 = vector.broadcast %116 : i32 to vector<1x512xi32>
    %118 = arith.addi %115, %117 : vector<1x512xi32>
    %c1000_i32 = arith.constant 1000 : i32
    %119 = vector.broadcast %c1000_i32 : i32 to vector<1x512xi32>
    %120 = arith.cmpi slt, %118, %119 : vector<1x512xi32>
    %cst_36 = arith.constant 0.000000e+00 : f32
    %121 = vector.broadcast %cst_36 : f32 to vector<1x512xf32>
    %122 = arith.select %120, %114, %121 : vector<1x512xi1>, vector<1x512xf32>
    %cst_37 = arith.constant dense<0.000000e+00> : vector<1xf32>
    %123 = vector.multi_reduction <add>, %122, %cst_37 [1] : vector<1x512xf32> to vector<1xf32>
    %124 = vector.shape_cast %123 : vector<1xf32> to vector<1x1xf32>
    %125 = vector.shape_cast %124 : vector<1x1xf32> to vector<1x1x1xf32>
    %c0_38 = arith.constant 0 : index
    %c0_39 = arith.constant 0 : index
    %c0_40 = arith.constant 0 : index
    %126 = vector.load %arg3[%c0_38, %c0_39, %c0_40] : memref<1x1x1xf32, #tpu.memory_space<vmem>>, vector<1x1x1xf32>
    tpu.vector_store %arg3[%c0_38, %c0_39, %c0_40], %125 {strides = array<i32>} : memref<1x1x1xf32, #tpu.memory_space<vmem>>, vector<1x1x1xf32>,
    return
  }
  func.func @transform_0(%arg0: i32) -> (i32, i32) {
    %c0_i32 = arith.constant 0 : i32
    %c0_i32_0 = arith.constant 0 : i32
    return %c0_i32, %arg0 : i32, i32
  }
  func.func @transform_1(%arg0: i32) -> (i32, i32) {
    %c0_i32 = arith.constant 0 : i32
    %c0_i32_0 = arith.constant 0 : i32
    return %c0_i32, %arg0 : i32, i32
  }
  func.func @transform_2(%arg0: i32) -> (i32, i32, i32) {
    %c0_i32 = arith.constant 0 : i32
    %c0_i32_0 = arith.constant 0 : i32
    %c0_i32_1 = arith.constant 0 : i32
    return %arg0, %c0_i32, %c0_i32_0 : i32, i32, i32
  }
}

</mosaic_0001>

<bundles_post_ra>
// kernel: tpu_custom_call.1
= control target key start
LH: loop header
LB: loop body
LE: loop exit
PB: predicated region body
PF: predicated region fallthrough
CT: control target
= control target key end

     0   :  { %7 = vsyncpa [#allocation3], 0  ;;  %s1960_s0 = inlined_call_operand.hbm [shape: f32[10,1000], index: 0, kind: input, shape index: {}]   ;;  %s1961_s1 = inlined_call_operand.hbm [shape: f32[10,1000], index: 1, kind: input, shape index: {}]   ;;  %s1962_s2 = inlined_call_operand.vmem [shape: f32[2,1,1], index: 2, kind: output, shape index: {}]  }
   0x1   :  { %9 = vsyncpa [#allocation3 + $0x1], 0 }
   0x2   :  { %10 = vsyncpa [#allocation5], 0 }
   0x3   :  { %12 = vsyncpa [#allocation5 + $0x1], 0  ;;  %s1276_s9 = smov 0   ;;  %s1278_s10 = smov 0  }
   0x4   :  { %s1280_s11 = smov 0   ;;  %s1282_s12 = smov 0  }
   0x5 LB: > { %s1295_s13 = sadd.s32 4294967295, %s1254_s12   ;;  %s1298_s14 = sadd.s32 1, %s1254_s12   ;;  %s1254_s12 = sphi %s1282_s12, %s1995_s12   ;;  %s1250_s11 = sphi %s1280_s11, %s1994_s11   ;;  %s1246_s10 = sphi %s1278_s10, %s1993_s10   ;;  %s1242_s9 = sphi %s1276_s9, %s1992_s9  }
   0x6   : > { %s22_s15 = ssub.s32 %s1254_s12, %s1298_s14  ;;  %s25_s16 = sadd.s32 1, %s1250_s11 }
   0x7   : > { %p23_p0 = scmp.eq.s32.totalorder %s22_s15, 0  ;;  %p32_p1 = scmp.ne.s32.totalorder %s1250_s11, %s1246_s10 }
   0x8   : > { %p33_p2 = scmp.eq.s32.totalorder %s1254_s12, 0  ;;  %p38_p3 = scmp.ne.s32.totalorder %s1246_s10, %s1242_s9 }
   0x9   : > { %s1308_s17 = scalar_select %p23_p0, %s1250_s11, %s25_s16  }
   0xa   : > { %p34_p4 = por %p33_p2, %p32_p1  ;;  %p39_p5 = scmp.eq.s32.totalorder %s1295_s13, 0 }
   0xb   : > { %p1092_p6 = scmp.lt.s32.totalorder %s1254_s12, 2  ;;  %s1317_s19 = sand.u32 1, %s1250_s11  }
   0xc   : > { %p1312_p7 = por %p39_p5, %p38_p3  ;;  %s1067_s20 = sshll.u32 %s1317_s19, 6 }
   0xd   : > { %s1079_s21 = sshll.u32 %s1254_s12, 9  ;;  %s118_s25 = scalar_lea.vmem [#allocation2], %s1067_s20 }
   0xe   : > { %s1972_s18 = scalar_select %p1312_p7, 1, 0 }
   0xf   : > { %s1326_s24 = scalar_lea.hbm %s1960_s0, %s1079_s21  ;;  %s125_s26 = sshll.u32 %s118_s25, 4  ;;  %s1330_s26 = int_to_ptr.vmem [resolvable:$true] %s125_s26 }
  0x10   : > { %p1332_p8 = pnand %p1092_p6, %p34_p4  ;;  %s115_s28 = scalar_lea.sflag [#allocation3], %s1317_s19 }
  0x11   : > { %s1160_s29 = scalar_lea.hbm %s1326_s24, 1024  ;;  %s1165_s4 = scalar_lea.hbm %s1960_s0, 2048 }
  0x12   : > { %p1161_p9 = scmp.ne.s32.totalorder %s1326_s24, %s1160_s29  ;;  %p1162_p10 = pneg %p1332_p8 }
  0x13   : > { %p1166_p13 = scmp.lt.s32.totalorder %s1326_s24, %s1960_s0  ;;  %p1167_p0 = scmp.lt.s32.totalorder %s1165_s4, %s1160_s29 }
  0x14   : > { %p1163_p11 = pnand %p1162_p10, %p1161_p9 }
  0x15   : > { %p1168_p1 = por %p1167_p0, %p1166_p13 }
  0x16   : > { %p1164_p12 = pneg %p1163_p11 }
  0x18   : > { %p1169_p2 = pnand %p1168_p1, %p1164_p12 }
  0x1a   : > { %1172 = shalt.err (!%p1169_p2)
}
  0x1b   : > { %s1173_s7 = scalar_lea.vmem %s1330_s26, 1024  ;;  %s1256_s8 = smov [#allocation2]  }
  0x1c   : > { %p1174_p3 = scmp.ne.s32.totalorder %s1330_s26, %s1173_s7  ;;  %s1178_s9 = sshll.u32 %s1256_s8, 4  ;;  %s1179_s9 = int_to_ptr.vmem [resolvable:$false] %s1178_s9 }
  0x1d   : > { %s1180_s15 = scalar_lea.vmem %s1179_s9, 2048  ;;  %p1181_p6 = scmp.lt.s32.totalorder %s1330_s26, %s1179_s9 }
  0x1e   : > { %p1176_p4 = pnand %p1174_p3, %p1162_p10  ;;  %p1182_p9 = scmp.lt.s32.totalorder %s1180_s15, %s1173_s7 }
  0x20   : > { %p1177_p5 = pneg %p1176_p4  ;;  %p1183_p11 = por %p1182_p9, %p1181_p6 }
  0x22   : > { %p1184_p13 = pnand %p1183_p11, %p1177_p5 }
  0x24   : > { %1187 = shalt.err (!%p1184_p13)
}
  0x25   : > { %s1257_s16 = smov 1024   ;;  %s1258_s22 = smov 512  }
  0x26   : > { %s1259_s23 = smov 32   ;;  %p1073_p12 = scmp.ge.s32.totalorder %s1254_s12, 1 }
  0x27   : > { %1088 = dma.hbm_to_vmem [thread:$0]  (!%p1332_p8), %s1326_s24, 1024, %s1330_s26, %s115_s28, %s1257_s16, %s1258_s22, %s1259_s23  }
  0x28   : > { %p154_p0 = scmp.lt.s32.totalorder %s1254_s12, 3  ;;  %s1377_s3 = scalar_lea.hbm %s1961_s1, %s1079_s21 }
  0x29   : > { %s139_s4 = scalar_lea.vmem [#allocation4], %s1067_s20  ;;  %s136_s24 = scalar_lea.sflag [#allocation5], %s1317_s19 }
  0x2a   : > { %p1368_p1 = pnand %p1073_p12, %p154_p0  ;;  %s146_s5 = sshll.u32 %s139_s4, 4  ;;  %s1381_s5 = int_to_ptr.vmem [resolvable:$true] %s146_s5 }
  0x2b   : > { %s1188_s26 = scalar_lea.hbm %s1377_s3, 1024  ;;  %s1193_s21 = scalar_lea.hbm %s1961_s1, 2048 }
  0x2c   : > { %p1189_p2 = scmp.ne.s32.totalorder %s1377_s3, %s1188_s26  ;;  %p1194_p5 = scmp.lt.s32.totalorder %s1377_s3, %s1961_s1 }
  0x2d   : > { %p1195_p6 = scmp.lt.s32.totalorder %s1193_s21, %s1188_s26 }
  0x2e   : > { %p1191_p3 = pnand %p1189_p2, %p1162_p10 }
  0x2f   : > { %p1196_p9 = por %p1195_p6, %p1194_p5 }
  0x30   : > { %p1192_p4 = pneg %p1191_p3 }
  0x32   : > { %p1197_p11 = pnand %p1196_p9, %p1192_p4 }
  0x34   : > { %1200 = shalt.err (!%p1197_p11)
}
  0x35   : > { %s1201_s19 = scalar_lea.vmem %s1381_s5, 1024  ;;  %s1260_s20 = smov [#allocation4]  }
  0x36   : > { %p1202_p13 = scmp.ne.s32.totalorder %s1381_s5, %s1201_s19  ;;  %s1206_s8 = sshll.u32 %s1260_s20, 4  ;;  %s1207_s8 = int_to_ptr.vmem [resolvable:$false] %s1206_s8 }
  0x37   : > { %s1208_s9 = scalar_lea.vmem %s1207_s8, 2048  ;;  %p1209_p2 = scmp.lt.s32.totalorder %s1381_s5, %s1207_s8 }
  0x38   : > { %p1204_p12 = pnand %p1202_p13, %p1162_p10  ;;  %p1210_p3 = scmp.lt.s32.totalorder %s1208_s9, %s1201_s19 }
  0x3a   : > { %p1205_p0 = pneg %p1204_p12  ;;  %p1211_p7 = por %p1210_p3, %p1209_p2 }
  0x3c   : > { %p1212_p5 = pnand %p1211_p7, %p1205_p0 }
  0x3e   : > { %1215 = shalt.err (!%p1212_p5)
}
  0x3f   : > { %1091 = dma.hbm_to_vmem [thread:$0]  (!%p1332_p8), %s1377_s3, 1024, %s1381_s5, %s136_s24, %s1257_s16, %s1258_s22, %s1259_s23  }
  0x40   : > { %158 = sbr.rel (%p1368_p1) target bundleno = 441 (0x1b9), region = 28 }
  0x45   : > { %s160_s15 = sand.u32 1, %s1246_s10   ;;  %p1975_p7 = scmp.ne.s32.totalorder %s1972_s18, 0 }
  0x46   : > { %s1074_s29 = sshll.u32 %s160_s15, 6  ;;  %s161_s30 = scalar_lea.sflag [#allocation3], %s160_s15 }
  0x47   : > { %s1412_s4 = scalar_lea.vmem [#allocation2], %s1074_s29 }
  0x48   : > { %1233 = dma.done.wait (%p1975_p7), %s161_s30, 1024  }
  0x49   : > { %1235 = vsyncadd (%p1975_p7), %s161_s30, 4294966272  ;;  %s170_s27 = scalar_lea.sflag [#allocation5], %s160_s15  ;;  %s173_s26 = scalar_lea.vmem [#allocation4], %s1074_s29 }
  0x4a   : > { %1237 = dma.done.wait (%p1975_p7), %s170_s27, 1024  }
  0x4b   : > { %1239 = vsyncadd (%p1975_p7), %s170_s27, 4294966272  ;;  %v1422_v0 = vld [vmem:[%s173_s26] sm:$0xff]  ;;  %vm218_vm0 = vcmask 1041408   ;;  %v1424_v1 = vld [vmem:[%s173_s26 + $0x8] sm:$0xff]  ;;  %s1076_s18 = sshll.u32 %s1295_s13, 9  ;;  %p199_p8 = scmp.lt.s32.totalorder %s1295_s13, 1 }
  0x4c   : > { %v1426_v2 = vld [vmem:[%s173_s26 + $0x10] sm:$0xff]  ;;  %v1428_v3 = vld [vmem:[%s173_s26 + $0x18] sm:$0xff]  ;;  %v1430_v4 = vld [vmem:[%s173_s26 + $0x20] sm:$0x3]  ;;  %vm980_vm5 = vcmask 0  }
  0x4d   : > { %v1432_v5 = vld [vmem:[%s173_s26 + $0x28] sm:$0x3]  ;;  %v1434_v6 = vld [vmem:[%s173_s26 + $0x30] sm:$0x3]  ;;  %v1436_v7 = vld [vmem:[%s173_s26 + $0x38] sm:$0x3] }
  0x4e   : > { %v219_v8 = vsel %vm218_vm0, %v1430_v4, 0.0  ;;  %v227_v9 = vsel %vm218_vm0, %v1432_v5, 0.0  ;;  %v235_v10 = vsel %vm218_vm0, %v1434_v6, 0.0  ;;  %v243_v14 = vsel %vm218_vm0, %v1436_v7, 0.0  ;;  %v1451_v20 = vld [vmem:[%s1412_s4 + $0x20] sm:$0x3] }
  0x4f   : > { %v220_v11 = vadd.f32 %v219_v8, %v1422_v0  ;;  %v228_v12 = vadd.f32 %v227_v9, %v1424_v1  ;;  %v236_v13 = vadd.f32 %v235_v10, %v1426_v2  ;;  %v244_v15 = vadd.f32 %v243_v14, %v1428_v3  ;;  %v1454_v24 = vld [vmem:[%s1412_s4 + $0x28] sm:$0x3]  ;;  %v1459_v31 = vld [vmem:[%s1412_s4] sm:$0xff]  ;;  %v1467_v37 = vld [vmem:[%s1412_s4 + $0x30] sm:$0x3]  ;;  %s1997_s13 = smov (!%p199_p8, %s1295_s13), 1 }
  0x50   : > { %v568_v30 = vsel %vm218_vm0, %v1451_v20, 0.0  ;;  %v1462_v32 = vld [vmem:[%s1412_s4 + $0x8] sm:$0xff]  ;;  %v576_v36 = vsel %vm218_vm0, %v1454_v24, 0.0  ;;  %1976 = vst [vmem:[#allocation8_spill] sm:$0xff] %v1467_v37  ;;  %v1470_v39 = vld [vmem:[%s1412_s4 + $0x38] sm:$0x3]  ;;  %s201_s23 = scalar_lea.vmem %s1962_s2, %s1997_s13 }
  0x51   : > { %v221_v16 = vrot.slane %v220_v11, 4  ;;  %v229_v17 = vrot.slane %v228_v12, 4  ;;  %v237_v18 = vrot.slane %v236_v13, 4  ;;  %v245_v19 = vrot.slane %v244_v15, 4  ;;  %1977 = vst [vmem:[#allocation9_spill] sm:$0xff] %v1470_v39  ;;  %v1479_v46 = vld [vmem:[%s1412_s4 + $0x10] sm:$0xff] }
  0x52   : > { %v1473_v44 = vadd.f32 %v568_v30, %v1459_v31  ;;  %v1476_v45 = vadd.f32 %v576_v36, %v1462_v32  ;;  %1978 = vst [vmem:[#allocation10_spill] sm:$0xff] %v1479_v46  ;;  %v584_v50 = vsel %vm218_vm0, %v1467_v37, 0.0  ;;  %v1485_v52 = vsel %vm218_vm0, %v1470_v39, 0.0 }
  0x53   : > { %v222_v21 = vadd.f32 %v221_v16, %v220_v11  ;;  %v230_v22 = vadd.f32 %v229_v17, %v228_v12  ;;  %v238_v23 = vadd.f32 %v237_v18, %v236_v13  ;;  %v246_v25 = vadd.f32 %v245_v19, %v244_v15 }
  0x54   : > { %v570_v57 = vrot.slane %v1473_v44, 4  ;;  %v578_v58 = vrot.slane %v1476_v45, 4  ;;  %v1490_v59 = vadd.f32 %v584_v50, %v1479_v46 }
  0x55   : > { %v223_v26 = vrot.slane %v222_v21, 2  ;;  %v231_v27 = vrot.slane %v230_v22, 2  ;;  %v239_v28 = vrot.slane %v238_v23, 2  ;;  %v247_v29 = vrot.slane %v246_v25, 2 }
  0x57   : > { %v224_v33 = vadd.f32 %v223_v26, %v222_v21  ;;  %v232_v34 = vadd.f32 %v231_v27, %v230_v22  ;;  %v240_v35 = vadd.f32 %v239_v28, %v238_v23  ;;  %v248_v38 = vadd.f32 %v247_v29, %v246_v25 }
  0x59   : > { %v225_v40 = vrot.slane %v224_v33, 1  ;;  %v233_v41 = vrot.slane %v232_v34, 1  ;;  %v241_v42 = vrot.slane %v240_v35, 1  ;;  %v249_v43 = vrot.slane %v248_v38, 1 }
  0x5b   : > { %v226_v47 = vadd.f32 %v225_v40, %v224_v33  ;;  %v234_v48 = vadd.f32 %v233_v41, %v232_v34  ;;  %v242_v49 = vadd.f32 %v241_v42, %v240_v35  ;;  %v250_v51 = vadd.f32 %v249_v43, %v248_v38 }
  0x5d   : > { %v252_v53 = vmul.f32 0.1, %v226_v47  ;;  %v253_v54 = vmul.f32 0.1, %v234_v48  ;;  %v254_v55 = vmul.f32 0.1, %v242_v49 }
  0x5e   : > { %v255_v56 = vmul.f32 0.1, %v250_v51 }
  0x5f   : > { %v256_v60 = vsub.f32 %v1422_v0, %v252_v53  ;;  %v257_v61 = vsub.f32 %v1424_v1, %v253_v54  ;;  %v258_v62 = vsub.f32 %v1426_v2, %v254_v55  ;;  %v260_v63 = vsub.f32 %v1430_v4, %v252_v53 }
  0x60   : > { %v259_v8 = vsub.f32 %v1428_v3, %v255_v56  ;;  %v261_v9 = vsub.f32 %v1432_v5, %v253_v54  ;;  %v262_v10 = vsub.f32 %v1434_v6, %v254_v55  ;;  %v263_v11 = vsub.f32 %v1436_v7, %v255_v56 }
  0x61   : > { %v264_v12 = vmul.f32 %v256_v60, %v256_v60  ;;  %v265_v13 = vmul.f32 %v257_v61, %v257_v61  ;;  %v266_v14 = vmul.f32 %v258_v62, %v258_v62  ;;  %v268_v15 = vmul.f32 %v260_v63, %v260_v63 }
  0x62   : > { %v267_v16 = vmul.f32 %v259_v8, %v259_v8  ;;  %v269_v17 = vmul.f32 %v261_v9, %v261_v9  ;;  %v270_v18 = vmul.f32 %v262_v10, %v262_v10  ;;  %v271_v19 = vmul.f32 %v263_v11, %v263_v11 }
  0x63   : > { %v272_v21 = vsel %vm218_vm0, %v260_v63, 0.0  ;;  %v280_v22 = vsel %vm218_vm0, %v261_v9, 0.0  ;;  %v288_v23 = vsel %vm218_vm0, %v262_v10, 0.0  ;;  %v296_v25 = vsel %vm218_vm0, %v263_v11, 0.0 }
  0x64   : > { %v273_v26 = vadd.f32 %v272_v21, %v256_v60  ;;  %v281_v27 = vadd.f32 %v280_v22, %v257_v61  ;;  %v289_v28 = vadd.f32 %v288_v23, %v258_v62  ;;  %v297_v29 = vadd.f32 %v296_v25, %v259_v8 }
  0x65   : > { %v308_v30 = vsel %vm218_vm0, %v268_v15, 0.0  ;;  %v316_v33 = vsel %vm218_vm0, %v269_v17, 0.0  ;;  %v324_v34 = vsel %vm218_vm0, %v270_v18, 0.0  ;;  %v332_v35 = vsel %vm218_vm0, %v271_v19, 0.0 }
  0x66   : > { %v274_v36 = vrot.slane %v273_v26, 4  ;;  %v282_v38 = vrot.slane %v281_v27, 4  ;;  %v290_v40 = vrot.slane %v289_v28, 4  ;;  %v298_v41 = vrot.slane %v297_v29, 4 }
  0x67   : > { %v309_v42 = vadd.f32 %v308_v30, %v264_v12  ;;  %v317_v43 = vadd.f32 %v316_v33, %v265_v13  ;;  %v325_v47 = vadd.f32 %v324_v34, %v266_v14  ;;  %v333_v48 = vadd.f32 %v332_v35, %v267_v16 }
  0x68   : > { %v275_v49 = vadd.f32 %v274_v36, %v273_v26  ;;  %v283_v50 = vadd.f32 %v282_v38, %v281_v27  ;;  %v291_v51 = vadd.f32 %v290_v40, %v289_v28  ;;  %v299_v53 = vadd.f32 %v298_v41, %v297_v29  ;;  %v1509_v27 = vld [vmem:[%s1412_s4 + $0x18] sm:$0xff] }
  0x69   : > { %v310_v54 = vrot.slane %v309_v42, 4  ;;  %v318_v55 = vrot.slane %v317_v43, 4  ;;  %v326_v56 = vrot.slane %v325_v47, 4  ;;  %v334_v60 = vrot.slane %v333_v48, 4  ;;  %1979 = vst [vmem:[#allocation11_spill] sm:$0xff] %v1509_v27 }
  0x6a   : > { %v276_v61 = vrot.slane %v275_v49, 2  ;;  %v284_v62 = vrot.slane %v283_v50, 2  ;;  %v292_v63 = vrot.slane %v291_v51, 2  ;;  %v300_v8 = vrot.slane %v299_v53, 2 }
  0x6b   : > { %v311_v9 = vadd.f32 %v310_v54, %v309_v42  ;;  %v319_v10 = vadd.f32 %v318_v55, %v317_v43  ;;  %v327_v11 = vadd.f32 %v326_v56, %v325_v47  ;;  %v335_v12 = vadd.f32 %v334_v60, %v333_v48 }
  0x6c   : > { %v277_v13 = vadd.f32 %v276_v61, %v275_v49  ;;  %v285_v14 = vadd.f32 %v284_v62, %v283_v50  ;;  %v293_v15 = vadd.f32 %v292_v63, %v291_v51  ;;  %v301_v16 = vadd.f32 %v300_v8, %v299_v53 }
  0x6d   : > { %v312_v17 = vrot.slane %v311_v9, 2  ;;  %v320_v18 = vrot.slane %v319_v10, 2  ;;  %v328_v19 = vrot.slane %v327_v11, 2  ;;  %v336_v21 = vrot.slane %v335_v12, 2 }
  0x6e   : > { %v278_v22 = vrot.slane %v277_v13, 1  ;;  %v286_v23 = vrot.slane %v285_v14, 1  ;;  %v294_v25 = vrot.slane %v293_v15, 1  ;;  %v302_v26 = vrot.slane %v301_v16, 1 }
  0x6f   : > { %v313_v28 = vadd.f32 %v312_v17, %v311_v9  ;;  %v321_v29 = vadd.f32 %v320_v18, %v319_v10  ;;  %v329_v30 = vadd.f32 %v328_v19, %v327_v11  ;;  %v337_v33 = vadd.f32 %v336_v21, %v335_v12 }
  0x70   : > { %v279_v34 = vadd.f32 %v278_v22, %v277_v13  ;;  %v287_v35 = vadd.f32 %v286_v23, %v285_v14  ;;  %v295_v36 = vadd.f32 %v294_v25, %v293_v15  ;;  %v303_v38 = vadd.f32 %v302_v26, %v301_v16 }
  0x71   : > { %v314_v40 = vrot.slane %v313_v28, 1  ;;  %v322_v41 = vrot.slane %v321_v29, 1  ;;  %v330_v42 = vrot.slane %v329_v30, 1  ;;  %v338_v43 = vrot.slane %v337_v33, 1 }
  0x72   : > { %v304_v47 = vmul.f32 0.1, %v279_v34  ;;  %v305_v48 = vmul.f32 0.1, %v287_v35  ;;  %v306_v49 = vmul.f32 0.1, %v295_v36  ;;  %v593_v50 = vadd.f32 %v1485_v52, %v1509_v27 }
  0x73   : > { %v307_v51 = vmul.f32 0.1, %v303_v38  ;;  %v315_v53 = vadd.f32 %v314_v40, %v313_v28  ;;  %v323_v54 = vadd.f32 %v322_v41, %v321_v29  ;;  %v331_v55 = vadd.f32 %v330_v42, %v329_v30 }
  0x74   : > { %v339_v56 = vadd.f32 %v338_v43, %v337_v33  ;;  %v344_v60 = vmul.f32 %v304_v47, %v304_v47  ;;  %v345_v61 = vmul.f32 %v305_v48, %v305_v48  ;;  %v346_v62 = vmul.f32 %v306_v49, %v306_v49 }
  0x75   : > { %v340_v63 = vmul.f32 0.1, %v315_v53  ;;  %v341_v8 = vmul.f32 0.1, %v323_v54  ;;  %v342_v9 = vmul.f32 0.1, %v331_v55  ;;  %v347_v10 = vmul.f32 %v307_v51, %v307_v51 }
  0x76   : > { %v343_v11 = vmul.f32 0.1, %v339_v56  ;;  %v586_v52 = vrot.slane %v1490_v59, 4  ;;  %v571_v16 = vadd.f32 %v570_v57, %v1473_v44  ;;  %v594_v17 = vrot.slane %v593_v50, 4 }
  0x77   : > { %v1513_v12 = vsub.f32 %v340_v63, %v344_v60  ;;  %v1515_v13 = vsub.f32 %v341_v8, %v345_v61  ;;  %v1517_v14 = vsub.f32 %v342_v9, %v346_v62  ;;  %v579_v18 = vadd.f32 %v578_v58, %v1476_v45 }
  0x78   : > { %v1520_v15 = vsub.f32 %v343_v11, %v347_v10  ;;  %v587_v19 = vadd.f32 %v586_v52, %v1490_v59  ;;  %v572_v21 = vrot.slane %v571_v16, 2  ;;  %v595_v22 = vadd.f32 %v594_v17, %v593_v50 }
  0x79   : > { %1980 = vst [vmem:[#allocation12_spill] sm:$0xff] %v1513_v12  ;;  %1981 = vst [vmem:[#allocation13_spill] sm:$0xff] %v1515_v13  ;;  %1128 = vrsqrt.f32 %v1513_v12  ;;  %v580_v23 = vrot.slane %v579_v18, 2  ;;  %v352_v28 = vsub.f32 %v1422_v0, %v304_v47  ;;  %v356_v29 = vsub.f32 %v1430_v4, %v304_v47 }
  0x7a   : > { %1982 = vst [vmem:[#allocation14_spill] sm:$0xff] %v1517_v14  ;;  %1983 = vst [vmem:[#allocation15_spill] sm:$0xff] %v1520_v15  ;;  %1130 = vrsqrt.f32 %v1515_v13  ;;  %v588_v25 = vrot.slane %v587_v19, 2  ;;  %v573_v44 = vadd.f32 %v572_v21, %v571_v16  ;;  %v596_v57 = vrot.slane %v595_v22, 2 }
  0x7b   : > { %1132 = vrsqrt.f32 %v1517_v14  ;;  %v581_v26 = vadd.f32 %v580_v23, %v579_v18  ;;  %v353_v58 = vsub.f32 %v1424_v1, %v305_v48  ;;  %v357_v30 = vsub.f32 %v1432_v5, %v305_v48 }
  0x7c   : > { %1134 = vrsqrt.f32 %v1520_v15  ;;  %v589_v45 = vadd.f32 %v588_v25, %v587_v19  ;;  %v574_v33 = vrot.slane %v573_v44, 1  ;;  %v597_v59 = vadd.f32 %v596_v57, %v595_v22 }
  0x7d   : > { %v354_v34 = vsub.f32 %v1426_v2, %v306_v49  ;;  %v358_v35 = vsub.f32 %v1434_v6, %v306_v49  ;;  %v582_v36 = vrot.slane %v581_v26, 1  ;;  %v355_v40 = vsub.f32 %v1428_v3, %v307_v51 }
  0x7e   : > { %v359_v41 = vsub.f32 %v1436_v7, %v307_v51  ;;  %v590_v1 = vrot.slane %v589_v45, 1  ;;  %v575_v2 = vadd.f32 %v574_v33, %v573_v44  ;;  %v598_v48 = vrot.slane %v597_v59, 1 }
  0x7f   : > { %v583_v7 = vadd.f32 %v582_v36, %v581_v26 }
  0x80   : > { %v591_v61 = vadd.f32 %v590_v1, %v589_v45  ;;  %v599_v9 = vadd.f32 %v598_v48, %v597_v59  ;;  %v600_v52 = vmul.f32 0.1, %v575_v2 }
  0x81   : > { %v601_v18 = vmul.f32 0.1, %v583_v7 }
  0x82   : > { %v602_v22 = vmul.f32 0.1, %v591_v61  ;;  %v603_v44 = vmul.f32 0.1, %v599_v9 }
  0x83   : > { %v609_v33 = vsub.f32 %v1454_v24, %v601_v18 }
  0x84   : > { %v610_v36 = vsub.f32 %v1467_v37, %v602_v22 }
  0x85   : > { %v628_v61 = vsel %vm218_vm0, %v609_v33, 0.0 }
  0x86   : > { %v1129_v38 = vpop.eup %1128 }
  0x87   : > { %v1131_v0 = vpop.eup %1130  ;;  %v1541_v42 = vmul.f32 %v1129_v38, %v352_v28  ;;  %v1543_v4 = vmul.f32 %v1129_v38, %v356_v29  ;;  %v604_v28 = vsub.f32 %v1459_v31, %v600_v52  ;;  %v608_v29 = vsub.f32 %v1451_v20, %v600_v52 }
  0x88   : > { %v1133_v43 = vpop.eup %1132  ;;  %v1545_v5 = vmul.f32 %v1131_v0, %v353_v58  ;;  %v1547_v47 = vmul.f32 %v1131_v0, %v357_v30  ;;  %v605_v30 = vsub.f32 %v1462_v32, %v601_v18  ;;  %v611_v0 = vsub.f32 %v1470_v39, %v603_v44 }
  0x89   : > { %v1135_v6 = vpop.eup %1134  ;;  %v1549_v49 = vmul.f32 %v1133_v43, %v354_v34  ;;  %v1551_v50 = vmul.f32 %v1133_v43, %v358_v35  ;;  %v372_v3 = vsel %vm218_vm0, %v1543_v4, 0.0  ;;  %v606_v35 = vsub.f32 %v1479_v46, %v602_v22 }
  0x8a   : > { %v1555_v51 = vmul.f32 %v1135_v6, %v355_v40  ;;  %v1557_v53 = vmul.f32 %v1135_v6, %v359_v41  ;;  %v373_v54 = vadd.f32 %v372_v3, %v1541_v42  ;;  %v380_v55 = vsel %vm218_vm0, %v1547_v47, 0.0 }
  0x8b   : > { %v381_v56 = vadd.f32 %v380_v55, %v1545_v5  ;;  %v388_v60 = vsel %vm218_vm0, %v1551_v50, 0.0  ;;  %v607_v41 = vsub.f32 %v1509_v27, %v603_v44  ;;  %v612_v2 = vmul.f32 %v604_v28, %v604_v28 }
  0x8c   : > { %v374_v62 = vrot.slane %v373_v54, 4  ;;  %v389_v63 = vadd.f32 %v388_v60, %v1549_v49  ;;  %v396_v8 = vsel %vm218_vm0, %v1557_v53, 0.0  ;;  %v620_v48 = vsel %vm218_vm0, %v608_v29, 0.0 }
  0x8d   : > { %v382_v10 = vrot.slane %v381_v56, 4  ;;  %v397_v11 = vadd.f32 %v396_v8, %v1555_v51  ;;  %v616_v7 = vmul.f32 %v608_v29, %v608_v29  ;;  %v618_v60 = vmul.f32 %v610_v36, %v610_v36 }
  0x8e   : > { %v375_v16 = vadd.f32 %v374_v62, %v373_v54  ;;  %v390_v17 = vrot.slane %v389_v63, 4  ;;  %v617_v54 = vmul.f32 %v609_v33, %v609_v33  ;;  %v636_v8 = vsel %vm218_vm0, %v610_v36, 0.0 }
  0x8f   : > { %v383_v19 = vadd.f32 %v382_v10, %v381_v56  ;;  %v398_v21 = vrot.slane %v397_v11, 4  ;;  %v644_v9 = vsel %vm218_vm0, %v611_v0, 0.0  ;;  %v614_v52 = vmul.f32 %v606_v35, %v606_v35 }
  0x90   : > { %v376_v23 = vrot.slane %v375_v16, 2  ;;  %v391_v25 = vadd.f32 %v390_v17, %v389_v63  ;;  %v621_v63 = vadd.f32 %v620_v48, %v604_v28  ;;  %v629_v18 = vadd.f32 %v628_v61, %v605_v30 }
  0x91   : > { %v384_v57 = vrot.slane %v383_v19, 2  ;;  %v399_v26 = vadd.f32 %v398_v21, %v397_v11  ;;  %v613_v11 = vmul.f32 %v605_v30, %v605_v30  ;;  %v664_v21 = vsel %vm218_vm0, %v617_v54, 0.0 }
  0x92   : > { %v377_v45 = vadd.f32 %v376_v23, %v375_v16  ;;  %v392_v58 = vrot.slane %v391_v25, 2  ;;  %v619_v16 = vmul.f32 %v611_v0, %v611_v0  ;;  %v637_v23 = vadd.f32 %v636_v8, %v606_v35 }
  0x93   : > { %v385_v59 = vadd.f32 %v384_v57, %v383_v19  ;;  %v400_v34 = vrot.slane %v399_v26, 2  ;;  %v656_v19 = vsel %vm218_vm0, %v616_v7, 0.0  ;;  %v672_v44 = vsel %vm218_vm0, %v618_v60, 0.0 }
  0x94   : > { %v378_v38 = vrot.slane %v377_v45, 1  ;;  %v393_v40 = vadd.f32 %v392_v58, %v391_v25  ;;  %v645_v25 = vadd.f32 %v644_v9, %v607_v41  ;;  %v622_v28 = vrot.slane %v621_v63, 4 }
  0x95   : > { %v386_v1 = vrot.slane %v385_v59, 1  ;;  %v401_v43 = vadd.f32 %v400_v34, %v399_v26  ;;  %v615_v26 = vmul.f32 %v607_v41, %v607_v41  ;;  %v665_v58 = vadd.f32 %v664_v21, %v613_v11 }
  0x96   : > { %v379_v6 = vadd.f32 %v378_v38, %v377_v45  ;;  %v394_v3 = vrot.slane %v393_v40, 1  ;;  %v657_v45 = vadd.f32 %v656_v19, %v612_v2  ;;  %v680_v33 = vsel %vm218_vm0, %v619_v16, 0.0 }
  0x97   : > { %v387_v55 = vadd.f32 %v386_v1, %v385_v59  ;;  %v402_v56 = vrot.slane %v401_v43, 1  ;;  %v630_v30 = vrot.slane %v629_v18, 4  ;;  %v673_v34 = vadd.f32 %v672_v44, %v614_v52 }
  0x98   : > { %v395_v62 = vadd.f32 %v394_v3, %v393_v40  ;;  %v404_v17 = vmul.f32 0.1, %v379_v6  ;;  %v638_v35 = vrot.slane %v637_v23, 4  ;;  %v646_v38 = vrot.slane %v645_v25, 4 }
  0x99   : > { %v403_v10 = vadd.f32 %v402_v56, %v401_v43  ;;  %v405_v22 = vmul.f32 0.1, %v387_v55  ;;  %v623_v41 = vadd.f32 %v622_v28, %v621_v63  ;;  %v681_v0 = vadd.f32 %v680_v33, %v615_v26 }
  0x9a   : > { %v406_v57 = vmul.f32 0.1, %v395_v62  ;;  %v1586_v59 = vsub.f32 %v1543_v4, %v404_v17  ;;  %v1595_v1 = vsub.f32 %v1541_v42, %v404_v17  ;;  %v658_v4 = vrot.slane %v657_v45, 4 }
  0x9b   : > { %v407_v29 = vmul.f32 0.1, %v403_v10  ;;  %v1589_v36 = vsub.f32 %v1547_v47, %v405_v22  ;;  %v666_v2 = vrot.slane %v665_v58, 4  ;;  %v1601_v48 = vsub.f32 %v1545_v5, %v405_v22 }
  0x9c   : > { %v1592_v40 = vsub.f32 %v1551_v50, %v406_v57  ;;  %v1605_v47 = vmul.f32 %v1586_v59, %v1586_v59  ;;  %v631_v6 = vadd.f32 %v630_v30, %v629_v18  ;;  %v674_v50 = vrot.slane %v673_v34, 4 }
  0x9d   : > { %v1598_v43 = vsub.f32 %v1557_v53, %v407_v29  ;;  %v1608_v3 = vsub.f32 %v1549_v49, %v406_v57  ;;  %v1612_v42 = vmul.f32 %v1589_v36, %v1589_v36  ;;  %v639_v53 = vadd.f32 %v638_v35, %v637_v23 }
  0x9e   : > { %v647_v7 = vadd.f32 %v646_v38, %v645_v25  ;;  %v1615_v54 = vsub.f32 %v1555_v51, %v407_v29  ;;  %v1619_v5 = vmul.f32 %v1592_v40, %v1592_v40  ;;  %v624_v55 = vrot.slane %v623_v41, 2 }
  0x9f   : > { %v682_v56 = vrot.slane %v681_v0, 4  ;;  %v1623_v60 = vmul.f32 %v1595_v1, %v1595_v1  ;;  %v1627_v49 = vmul.f32 %v1598_v43, %v1598_v43  ;;  %v659_v61 = vadd.f32 %v658_v4, %v657_v45 }
  0xa0   : > { %v667_v62 = vadd.f32 %v666_v2, %v665_v58  ;;  %v1631_v51 = vmul.f32 %v1601_v48, %v1601_v48  ;;  %v468_v63 = vsel %vm218_vm0, %v1605_v47, 0.0  ;;  %v632_v8 = vrot.slane %v631_v6, 2 }
  0xa1   : > { %v675_v9 = vadd.f32 %v674_v50, %v673_v34  ;;  %v1637_v10 = vmul.f32 %v1608_v3, %v1608_v3  ;;  %v476_v11 = vsel %vm218_vm0, %v1612_v42, 0.0  ;;  %v640_v52 = vrot.slane %v639_v53, 2 }
  0xa2   : > { %v648_v16 = vrot.slane %v647_v7, 2  ;;  %v1643_v17 = vmul.f32 %v1615_v54, %v1615_v54  ;;  %v484_v18 = vsel %vm218_vm0, %v1619_v5, 0.0  ;;  %v625_v19 = vadd.f32 %v624_v55, %v623_v41 }
  0xa3   : > { %v683_v21 = vadd.f32 %v682_v56, %v681_v0  ;;  %v469_v22 = vadd.f32 %v468_v63, %v1623_v60  ;;  %v492_v23 = vsel %vm218_vm0, %v1627_v49, 0.0  ;;  %v660_v25 = vrot.slane %v659_v61, 2 }
  0xa4   : > { %v668_v44 = vrot.slane %v667_v62, 2  ;;  %v477_v57 = vadd.f32 %v476_v11, %v1631_v51  ;;  %v676_v26 = vrot.slane %v675_v9, 2  ;;  %v485_v28 = vadd.f32 %v484_v18, %v1637_v10 }
  0xa5   : > { %v633_v29 = vadd.f32 %v632_v8, %v631_v6  ;;  %v641_v45 = vadd.f32 %v640_v52, %v639_v53  ;;  %v649_v58 = vadd.f32 %v648_v16, %v647_v7  ;;  %v432_v33 = vsel %vm218_vm0, %v1586_v59, 0.0 }
  0xa6   : > { %v440_v30 = vsel %vm218_vm0, %v1589_v36, 0.0  ;;  %v493_v34 = vadd.f32 %v492_v23, %v1643_v17  ;;  %v684_v35 = vrot.slane %v683_v21, 2  ;;  %v470_v38 = vrot.slane %v469_v22, 4 }
  0xa7   : > { %v626_v41 = vrot.slane %v625_v19, 1  ;;  %v661_v0 = vadd.f32 %v660_v25, %v659_v61  ;;  %v669_v4 = vadd.f32 %v668_v44, %v667_v62  ;;  %v448_v2 = vsel %vm218_vm0, %v1592_v40, 0.0 }
  0xa8   : > { %v456_v6 = vsel %vm218_vm0, %v1598_v43, 0.0  ;;  %v478_v50 = vrot.slane %v477_v57, 4  ;;  %v677_v53 = vadd.f32 %v676_v26, %v675_v9  ;;  %v433_v7 = vadd.f32 %v432_v33, %v1595_v1 }
  0xa9   : > { %v441_v55 = vadd.f32 %v440_v30, %v1601_v48  ;;  %v486_v56 = vrot.slane %v485_v28, 4  ;;  %v634_v63 = vrot.slane %v633_v29, 1  ;;  %v494_v8 = vrot.slane %v493_v34, 4 }
  0xaa   : > { %v642_v11 = vrot.slane %v641_v45, 1  ;;  %v650_v52 = vrot.slane %v649_v58, 1  ;;  %v685_v16 = vadd.f32 %v684_v35, %v683_v21  ;;  %v449_v61 = vadd.f32 %v448_v2, %v1608_v3 }
  0xab   : > { %v457_v62 = vadd.f32 %v456_v6, %v1615_v54  ;;  %v471_v18 = vadd.f32 %v470_v38, %v469_v22  ;;  %v662_v23 = vrot.slane %v661_v0, 1  ;;  %v479_v25 = vadd.f32 %v478_v50, %v477_v57 }
  0xac   : > { %v627_v44 = vadd.f32 %v626_v41, %v625_v19  ;;  %v670_v15 = vrot.slane %v669_v4, 1  ;;  %v678_v9 = vrot.slane %v677_v53, 1  ;;  %v434_v26 = vrot.slane %v433_v7, 4 }
  0xad   : > { %v442_v33 = vrot.slane %v441_v55, 4  ;;  %v487_v14 = vadd.f32 %v486_v56, %v485_v28  ;;  %v635_v30 = vadd.f32 %v634_v63, %v633_v29  ;;  %v495_v13 = vadd.f32 %v494_v8, %v493_v34 }
  0xae   : > { %v643_v12 = vadd.f32 %v642_v11, %v641_v45  ;;  %v651_v39 = vadd.f32 %v650_v52, %v649_v58  ;;  %v686_v27 = vrot.slane %v685_v16, 1  ;;  %v450_v37 = vrot.slane %v449_v61, 4 }
  0xaf   : > { %v458_v21 = vrot.slane %v457_v62, 4  ;;  %v472_v35 = vrot.slane %v471_v18, 2  ;;  %v663_v2 = vadd.f32 %v662_v23, %v661_v0  ;;  %v480_v46 = vrot.slane %v479_v25, 2 }
  0xb0   : > { %v1665_v6 = vmul.f32 0.1, %v627_v44  ;;  %v671_v22 = vadd.f32 %v670_v15, %v669_v4  ;;  %v679_v57 = vadd.f32 %v678_v9, %v677_v53  ;;  %v435_v19 = vadd.f32 %v434_v26, %v433_v7 }
  0xb1   : > { %v443_v38 = vadd.f32 %v442_v33, %v441_v55  ;;  %v488_v41 = vrot.slane %v487_v14, 2  ;;  %v1667_v50 = vmul.f32 0.1, %v635_v30  ;;  %v496_v28 = vrot.slane %v495_v13, 2 }
  0xb2   : > { %v1669_v29 = vmul.f32 0.1, %v643_v12  ;;  %v1671_v45 = vmul.f32 0.1, %v651_v39  ;;  %v687_v58 = vadd.f32 %v686_v27, %v685_v16  ;;  %v451_v34 = vadd.f32 %v450_v37, %v449_v61 }
  0xb3   : > { %v459_v56 = vadd.f32 %v458_v21, %v457_v62  ;;  %v473_v63 = vadd.f32 %v472_v35, %v471_v18  ;;  %v688_v0 = vmul.f32 0.1, %v663_v2  ;;  %v481_v8 = vadd.f32 %v480_v46, %v479_v25 }
  0xb4   : > { %v689_v11 = vmul.f32 0.1, %v671_v22  ;;  %v690_v52 = vmul.f32 0.1, %v679_v57  ;;  %v692_v15 = vmul.f32 %v1665_v6, %v1665_v6  ;;  %v436_v4 = vrot.slane %v435_v19, 2 }
  0xb5   : > { %v444_v53 = vrot.slane %v443_v38, 2  ;;  %v489_v7 = vadd.f32 %v488_v41, %v487_v14  ;;  %v693_v12 = vmul.f32 %v1667_v50, %v1667_v50  ;;  %v497_v55 = vadd.f32 %v496_v28, %v495_v13 }
  0xb6   : > { %v691_v39 = vmul.f32 0.1, %v687_v58  ;;  %v694_v37 = vmul.f32 %v1669_v29, %v1669_v29  ;;  %v695_v27 = vmul.f32 %v1671_v45, %v1671_v45  ;;  %v424_v46 = vmul.f32 %v1623_v60, %v1595_v1 }
  0xb7   : > { %v452_v16 = vrot.slane %v451_v34, 2  ;;  %v460_v61 = vrot.slane %v459_v56, 2  ;;  %v474_v62 = vrot.slane %v473_v63, 1  ;;  %v425_v14 = vmul.f32 %v1631_v51, %v1601_v48 }
  0xb8   : > { %v428_v18 = vmul.f32 %v1605_v47, %v1586_v59  ;;  %v429_v13 = vmul.f32 %v1612_v42, %v1589_v36  ;;  %v482_v23 = vrot.slane %v481_v8, 1  ;;  %v426_v25 = vmul.f32 %v1637_v10, %v1608_v3 }
  0xb9   : > { %v437_v44 = vadd.f32 %v436_v4, %v435_v19  ;;  %v445_v9 = vadd.f32 %v444_v53, %v443_v38  ;;  %v490_v26 = vrot.slane %v489_v7, 1  ;;  %v427_v1 = vmul.f32 %v1643_v17, %v1615_v54 }
  0xba   : > { %v430_v60 = vmul.f32 %v1619_v5, %v1592_v40  ;;  %v431_v48 = vmul.f32 %v1627_v49, %v1598_v43  ;;  %v498_v59 = vrot.slane %v497_v55, 1  ;;  %v453_v47 = vadd.f32 %v452_v16, %v451_v34 }
  0xbb   : > { %v461_v51 = vadd.f32 %v460_v61, %v459_v56  ;;  %v475_v36 = vadd.f32 %v474_v62, %v473_v63  ;;  %v1697_v42 = vsub.f32 %v688_v0, %v692_v15  ;;  %v483_v33 = vadd.f32 %v482_v23, %v481_v8 }
  0xbc   : > { %v504_v3 = vsel %vm218_vm0, %v428_v18, 0.0  ;;  %v512_v10 = vsel %vm218_vm0, %v429_v13, 0.0  ;;  %v1701_v30 = vsub.f32 %v689_v11, %v693_v12  ;;  %v438_v54 = vrot.slane %v437_v44, 1 }
  0xbd   : > { %v446_v17 = vrot.slane %v445_v9, 1  ;;  %v491_v21 = vadd.f32 %v490_v26, %v489_v7  ;;  %v1703_v40 = vsub.f32 %v690_v52, %v694_v37  ;;  %v499_v5 = vadd.f32 %v498_v59, %v497_v55 }
  0xbe   : > { %v520_v43 = vsel %vm218_vm0, %v430_v60, 0.0  ;;  %v528_v49 = vsel %vm218_vm0, %v431_v48, 0.0  ;;  %v1707_v35 = vsub.f32 %v691_v39, %v695_v27  ;;  %v454_v2 = vrot.slane %v453_v47, 1 }
  0xbf   : > { %v505_v22 = vadd.f32 %v504_v3, %v424_v46  ;;  %v513_v57 = vadd.f32 %v512_v10, %v425_v14  ;;  %1136 = vrsqrt.f32 %v1697_v42  ;;  %v462_v19 = vrot.slane %v461_v51, 1  ;;  %v1986_v3 = vld [vmem:[#allocation11_spill] sm:$0xff] }
  0xc0   : > { %v500_v38 = vmul.f32 0.1, %v475_v36  ;;  %v501_v41 = vmul.f32 0.1, %v483_v33  ;;  %1138 = vrsqrt.f32 %v1701_v30  ;;  %v439_v28 = vadd.f32 %v438_v54, %v437_v44 }
  0xc1   : > { %v521_v58 = vadd.f32 %v520_v43, %v426_v25  ;;  %v529_v34 = vadd.f32 %v528_v49, %v427_v1  ;;  %1140 = vrsqrt.f32 %v1703_v40  ;;  %v447_v56 = vadd.f32 %v446_v17, %v445_v9 }
  0xc2   : > { %v502_v63 = vmul.f32 0.1, %v491_v21  ;;  %v503_v0 = vmul.f32 0.1, %v499_v5  ;;  %1142 = vrsqrt.f32 %v1707_v35  ;;  %v506_v8 = vrot.slane %v505_v22, 4 }
  0xc3   : > { %v514_v11 = vrot.slane %v513_v57, 4  ;;  %v455_v52 = vadd.f32 %v454_v2, %v453_v47  ;;  %v463_v15 = vadd.f32 %v462_v19, %v461_v51  ;;  %v540_v4 = vmul.f32 3.0, %v500_v38  ;;  %v1984_v47 = vld [vmem:[#allocation10_spill] sm:$0xff]  ;;  %v1985_v51 = vld [vmem:[#allocation8_spill] sm:$0xff] }
  0xc4   : > { %v541_v53 = vmul.f32 3.0, %v501_v41  ;;  %v522_v7 = vrot.slane %v521_v58, 4  ;;  %v530_v12 = vrot.slane %v529_v34, 4  ;;  %v1713_v55 = vmul.f32 0.1, %v439_v28 }
  0xc5   : > { %v1715_v39 = vmul.f32 0.1, %v447_v56  ;;  %v542_v37 = vmul.f32 3.0, %v502_v63  ;;  %v543_v27 = vmul.f32 3.0, %v503_v0  ;;  %v507_v46 = vadd.f32 %v506_v8, %v505_v22 }
  0xc6   : > { %v515_v16 = vadd.f32 %v514_v11, %v513_v57  ;;  %v1717_v61 = vmul.f32 0.1, %v455_v52  ;;  %v1719_v62 = vmul.f32 0.1, %v463_v15  ;;  %v1722_v14 = vmul.f32 %v540_v4, %v1713_v55 }
  0xc7   : > { %v1725_v18 = vmul.f32 %v541_v53, %v1715_v39  ;;  %v523_v13 = vadd.f32 %v522_v7, %v521_v58  ;;  %v531_v23 = vadd.f32 %v530_v12, %v529_v34  ;;  %v700_v25 = vsub.f32 %v1459_v31, %v1665_v6 }
  0xc8   : > { %v704_v44 = vsub.f32 %v1451_v20, %v1665_v6  ;;  %v1732_v9 = vmul.f32 %v542_v37, %v1717_v61  ;;  %v1735_v26 = vmul.f32 %v543_v27, %v1719_v62  ;;  %v701_v1 = vsub.f32 %v1462_v32, %v1667_v50  ;;  %v1987_v32 = vld [vmem:[#allocation9_spill] sm:$0xff] }
  0xc9   : > { %v705_v60 = vsub.f32 %v1454_v24, %v1667_v50  ;;  %v508_v48 = vrot.slane %v507_v46, 2  ;;  %v516_v59 = vrot.slane %v515_v16, 2  ;;  %v702_v31 = vsub.f32 %v1984_v47, %v1669_v29 }
  0xca   : > { %v706_v20 = vsub.f32 %v1985_v51, %v1669_v29  ;;  %v552_v36 = vmul.f32 2.0, %v1713_v55  ;;  %v553_v33 = vmul.f32 2.0, %v1715_v39  ;;  %v703_v10 = vsub.f32 %v1986_v3, %v1671_v45 }
  0xcb   : > { %v707_v54 = vsub.f32 %v1987_v32, %v1671_v45  ;;  %v524_v50 = vrot.slane %v523_v13, 2  ;;  %v532_v17 = vrot.slane %v531_v23, 2  ;;  %v554_v29 = vmul.f32 2.0, %v1717_v61 }
  0xcc   : > { %v1137_v6 = vpop.eup %1136  ;;  %v555_v49 = vmul.f32 2.0, %v1719_v62  ;;  %v509_v19 = vadd.f32 %v508_v48, %v507_v46  ;;  %v517_v63 = vadd.f32 %v516_v59, %v515_v16  ;;  %v556_v0 = vmul.f32 %v552_v36, %v1713_v55 }
  0xcd   : > { %v1139_v24 = vpop.eup %1138  ;;  %v1751_v21 = vmul.f32 %v1137_v6, %v700_v25  ;;  %v1753_v5 = vmul.f32 %v1137_v6, %v704_v44  ;;  %v525_v52 = vadd.f32 %v524_v50, %v523_v13  ;;  %v533_v7 = vadd.f32 %v532_v17, %v531_v23 }
  0xce   : > { %v1141_v43 = vpop.eup %1140  ;;  %v1757_v2 = vmul.f32 %v1139_v24, %v701_v1  ;;  %v1759_v22 = vmul.f32 %v1139_v24, %v705_v60  ;;  %v557_v12 = vmul.f32 %v553_v33, %v1715_v39  ;;  %v558_v46 = vmul.f32 %v554_v29, %v1717_v61 }
  0xcf   : > { %v1143_v57 = vpop.eup %1142  ;;  %v1761_v38 = vmul.f32 %v1141_v43, %v702_v31  ;;  %v1763_v45 = vmul.f32 %v1141_v43, %v706_v20  ;;  %v720_v41 = vsel %vm218_vm0, %v1753_v5, 0.0  ;;  %v559_v16 = vmul.f32 %v555_v49, %v1719_v62  ;;  %v1988_v49 = vld [vmem:[#allocation12_spill] sm:$0xff] }
  0xd0   : > { %v1767_v28 = vmul.f32 %v1143_v57, %v703_v10  ;;  %v1769_v58 = vmul.f32 %v1143_v57, %v707_v54  ;;  %v721_v34 = vadd.f32 %v720_v41, %v1751_v21  ;;  %v728_v56 = vsel %vm218_vm0, %v1759_v22, 0.0 }
  0xd1   : > { %v729_v8 = vadd.f32 %v728_v56, %v1757_v2  ;;  %v736_v11 = vsel %vm218_vm0, %v1763_v45, 0.0  ;;  %v510_v1 = vrot.slane %v509_v19, 1  ;;  %v518_v13 = vrot.slane %v517_v63, 1 }
  0xd2   : > { %v722_v15 = vrot.slane %v721_v34, 4  ;;  %v737_v4 = vadd.f32 %v736_v11, %v1761_v38  ;;  %v744_v53 = vsel %vm218_vm0, %v1769_v58, 0.0  ;;  %v526_v59 = vrot.slane %v525_v52, 1 }
  0xd3   : > { %v730_v37 = vrot.slane %v729_v8, 4  ;;  %v745_v27 = vadd.f32 %v744_v53, %v1767_v28  ;;  %v1786_v47 = vmul.f32 %v556_v0, %v1713_v55  ;;  %v534_v51 = vrot.slane %v533_v7, 1 }
  0xd4   : > { %v723_v25 = vadd.f32 %v722_v15, %v721_v34  ;;  %v738_v44 = vrot.slane %v737_v4, 4  ;;  %v1789_v20 = vmul.f32 %v557_v12, %v1715_v39  ;;  %v1792_v33 = vmul.f32 %v558_v46, %v1717_v61  ;;  %v1989_v61 = vld [vmem:[#allocation13_spill] sm:$0xff] }
  0xd5   : > { %v731_v60 = vadd.f32 %v730_v37, %v729_v8  ;;  %v746_v48 = vrot.slane %v745_v27, 4  ;;  %v1795_v3 = vmul.f32 %v559_v16, %v1719_v62  ;;  %v511_v54 = vadd.f32 %v510_v1, %v509_v19  ;;  %v1990_v8 = vld [vmem:[#allocation14_spill] sm:$0xff] }
  0xd6   : > { %v724_v23 = vrot.slane %v723_v25, 2  ;;  %v739_v31 = vadd.f32 %v738_v44, %v737_v4  ;;  %v519_v24 = vadd.f32 %v518_v13, %v517_v63  ;;  %v527_v17 = vadd.f32 %v526_v59, %v525_v52  ;;  %v1991_v63 = vld [vmem:[#allocation15_spill] sm:$0xff] }
  0xd7   : > { %v732_v6 = vrot.slane %v731_v60, 2  ;;  %v747_v36 = vadd.f32 %v746_v48, %v745_v27  ;;  %v920_v39 = vmul.f32 %v1697_v42, %v1988_v49  ;;  %v535_v57 = vadd.f32 %v534_v51, %v533_v7 }
  0xd8   : > { %v725_v10 = vadd.f32 %v724_v23, %v723_v25  ;;  %v740_v32 = vrot.slane %v739_v31, 2  ;;  %v921_v56 = vmul.f32 %v1701_v30, %v1989_v61  ;;  %v922_v19 = vmul.f32 %v1703_v40, %v1990_v8 }
  0xd9   : > { %v733_v55 = vadd.f32 %v732_v6, %v731_v60  ;;  %v748_v50 = vrot.slane %v747_v36, 2  ;;  %v923_v11 = vmul.f32 %v1707_v35, %v1991_v63  ;;  %v1805_v52 = vmul.f32 0.1, %v511_v54 }
  0xda   : > { %v726_v43 = vrot.slane %v725_v10, 1  ;;  %v741_v29 = vadd.f32 %v740_v32, %v739_v31  ;;  %v1807_v15 = vmul.f32 0.1, %v519_v24  ;;  %v1809_v53 = vmul.f32 0.1, %v527_v17 }
  0xdb   : > { %v734_v41 = vrot.slane %v733_v55, 1  ;;  %v749_v34 = vadd.f32 %v748_v50, %v747_v36  ;;  %v932_v37 = vmul.f32 %v920_v39, %v920_v39  ;;  %v1811_v30 = vmul.f32 0.1, %v535_v57 }
  0xdc   : > { %v727_v62 = vadd.f32 %v726_v43, %v725_v10  ;;  %v742_v0 = vrot.slane %v741_v29, 1  ;;  %v933_v16 = vmul.f32 %v921_v56, %v921_v56  ;;  %v934_v35 = vmul.f32 %v922_v19, %v922_v19 }
  0xdd   : > { %v735_v4 = vadd.f32 %v734_v41, %v733_v55  ;;  %v750_v42 = vrot.slane %v749_v34, 1  ;;  %v935_v44 = vmul.f32 %v923_v11, %v923_v11  ;;  %v548_v59 = vsub.f32 %v1805_v52, %v1722_v14 }
  0xde   : > { %v743_v7 = vadd.f32 %v742_v0, %v741_v29  ;;  %v752_v12 = vmul.f32 0.1, %v727_v62  ;;  %v549_v23 = vsub.f32 %v1807_v15, %v1725_v18  ;;  %1144 = vrcp.f32 %v932_v37 }
  0xdf   : > { %v751_v27 = vadd.f32 %v750_v42, %v749_v34  ;;  %v753_v46 = vmul.f32 0.1, %v735_v4  ;;  %1146 = vrcp.f32 %v933_v16 }
  0xe0   : > { %v754_v40 = vmul.f32 0.1, %v743_v7  ;;  %v1814_v25 = vsub.f32 %v1753_v5, %v752_v12  ;;  %v1817_v13 = vsub.f32 %v1751_v21, %v752_v12  ;;  %1148 = vrcp.f32 %v934_v35 }
  0xe1   : > { %v755_v1 = vmul.f32 0.1, %v751_v27  ;;  %v1820_v60 = vsub.f32 %v1757_v2, %v753_v46  ;;  %v1823_v48 = vsub.f32 %v1759_v22, %v753_v46  ;;  %v550_v22 = vsub.f32 %v1809_v53, %v1732_v9 }
  0xe2   : > { %v1830_v5 = vsub.f32 %v1763_v45, %v754_v40  ;;  %v1833_v31 = vsub.f32 %v1761_v38, %v754_v40  ;;  %v768_v51 = vmul.f32 %v1814_v25, %v1814_v25  ;;  %v551_v38 = vsub.f32 %v1811_v30, %v1735_v26 }
  0xe3   : > { %v1836_v21 = vsub.f32 %v1767_v28, %v755_v1  ;;  %v1839_v2 = vsub.f32 %v1769_v58, %v755_v1  ;;  %v769_v45 = vmul.f32 %v1823_v48, %v1823_v48  ;;  %v1851_v28 = vmul.f32 %v1817_v13, %v1817_v13 }
  0xe4   : > { %v1855_v58 = vmul.f32 %v1820_v60, %v1820_v60  ;;  %1150 = vrcp.f32 %v935_v44  ;;  %v1859_v6 = vmul.f32 %v1830_v5, %v1830_v5  ;;  %v780_v10 = vsel %vm218_vm0, %v1814_v25, 0.0 }
  0xe5   : > { %v1863_v36 = vmul.f32 %v1839_v2, %v1839_v2  ;;  %v788_v32 = vsel %vm218_vm0, %v1823_v48, 0.0  ;;  %v1871_v54 = vmul.f32 %v1833_v31, %v1833_v31  ;;  %v1875_v24 = vmul.f32 %v1836_v21, %v1836_v21 }
  0xe6   : > { %v781_v55 = vadd.f32 %v780_v10, %v1817_v13  ;;  %v789_v50 = vadd.f32 %v788_v32, %v1820_v60  ;;  %v796_v17 = vsel %vm218_vm0, %v1830_v5, 0.0  ;;  %v804_v43 = vsel %vm218_vm0, %v1839_v2, 0.0 }
  0xe7   : > { %v816_v29 = vsel %vm218_vm0, %v768_v51, 0.0  ;;  %v824_v49 = vsel %vm218_vm0, %v769_v45, 0.0  ;;  %v797_v41 = vadd.f32 %v796_v17, %v1833_v31  ;;  %v805_v34 = vadd.f32 %v804_v43, %v1836_v21 }
  0xe8   : > { %v782_v39 = vrot.slane %v781_v55, 4  ;;  %v790_v57 = vrot.slane %v789_v50, 4  ;;  %v817_v61 = vadd.f32 %v816_v29, %v1851_v28  ;;  %v825_v56 = vadd.f32 %v824_v49, %v1855_v58 }
  0xe9   : > { %v832_v62 = vsel %vm218_vm0, %v1859_v6, 0.0  ;;  %v840_v0 = vsel %vm218_vm0, %v1863_v36, 0.0  ;;  %v798_v63 = vrot.slane %v797_v41, 4  ;;  %v806_v11 = vrot.slane %v805_v34, 4 }
  0xea   : > { %v783_v8 = vadd.f32 %v782_v39, %v781_v55  ;;  %v791_v19 = vadd.f32 %v790_v57, %v789_v50  ;;  %v818_v4 = vrot.slane %v817_v61, 4  ;;  %v826_v42 = vrot.slane %v825_v56, 4 }
  0xeb   : > { %v833_v7 = vadd.f32 %v832_v62, %v1871_v54  ;;  %v841_v12 = vadd.f32 %v840_v0, %v1875_v24  ;;  %v799_v46 = vadd.f32 %v798_v63, %v797_v41  ;;  %v807_v16 = vadd.f32 %v806_v11, %v805_v34  ;;  %v1895_v10 = vpop.eup %1144 }
  0xec   : > { %v784_v37 = vrot.slane %v783_v8, 2  ;;  %v792_v27 = vrot.slane %v791_v19, 2  ;;  %v819_v40 = vadd.f32 %v818_v4, %v817_v61  ;;  %v827_v35 = vadd.f32 %v826_v42, %v825_v56  ;;  %v1897_v43 = vpop.eup %1146 }
  0xed   : > { %v834_v44 = vrot.slane %v833_v7, 4  ;;  %v842_v1 = vrot.slane %v841_v12, 4  ;;  %v800_v50 = vrot.slane %v799_v46, 2  ;;  %v808_v17 = vrot.slane %v807_v16, 2  ;;  %v1899_v62 = vpop.eup %1148 }
  0xee   : > { %v785_v32 = vadd.f32 %v784_v37, %v783_v8  ;;  %v793_v55 = vadd.f32 %v792_v27, %v791_v19  ;;  %v820_v29 = vrot.slane %v819_v40, 2  ;;  %v828_v49 = vrot.slane %v827_v35, 2 }
  0xef   : > { %v835_v39 = vadd.f32 %v834_v44, %v833_v7  ;;  %v843_v57 = vadd.f32 %v842_v1, %v841_v12  ;;  %v776_v41 = vmul.f32 %v768_v51, %v1814_v25  ;;  %v777_v34 = vmul.f32 %v769_v45, %v1823_v48 }
  0xf0   : > { %v801_v61 = vadd.f32 %v800_v50, %v799_v46  ;;  %v809_v56 = vadd.f32 %v808_v17, %v807_v16  ;;  %v821_v8 = vadd.f32 %v820_v29, %v819_v40  ;;  %v829_v19 = vadd.f32 %v828_v49, %v827_v35 }
  0xf1   : > { %v1903_v0 = vpop.eup %1150  ;;  %v836_v63 = vrot.slane %v835_v39, 2  ;;  %v844_v11 = vrot.slane %v843_v57, 2  ;;  %v786_v4 = vrot.slane %v785_v32, 1  ;;  %v794_v42 = vrot.slane %v793_v55, 1 }
  0xf2   : > { %v802_v37 = vrot.slane %v801_v61, 1  ;;  %v810_v27 = vrot.slane %v809_v56, 1  ;;  %v822_v7 = vrot.slane %v821_v8, 1  ;;  %v830_v12 = vrot.slane %v829_v19, 1 }
  0xf3   : > { %v837_v44 = vadd.f32 %v836_v63, %v835_v39  ;;  %v845_v1 = vadd.f32 %v844_v11, %v843_v57  ;;  %v772_v25 = vmul.f32 %v1851_v28, %v1817_v13  ;;  %v773_v48 = vmul.f32 %v1855_v58, %v1820_v60 }
  0xf4   : > { %v778_v51 = vmul.f32 %v1859_v6, %v1830_v5  ;;  %v779_v45 = vmul.f32 %v1863_v36, %v1839_v2  ;;  %v774_v46 = vmul.f32 %v1871_v54, %v1833_v31  ;;  %v775_v16 = vmul.f32 %v1875_v24, %v1836_v21 }
  0xf5   : > { %v838_v40 = vrot.slane %v837_v44, 1  ;;  %v846_v35 = vrot.slane %v845_v1, 1  ;;  %v787_v50 = vadd.f32 %v786_v4, %v785_v32  ;;  %v795_v17 = vadd.f32 %v794_v42, %v793_v55 }
  0xf6   : > { %v852_v13 = vsel %vm218_vm0, %v776_v41, 0.0  ;;  %v860_v60 = vsel %vm218_vm0, %v777_v34, 0.0  ;;  %v803_v28 = vadd.f32 %v802_v37, %v801_v61  ;;  %v811_v58 = vadd.f32 %v810_v27, %v809_v56 }
  0xf7   : > { %v823_v5 = vadd.f32 %v822_v7, %v821_v8  ;;  %v831_v6 = vadd.f32 %v830_v12, %v829_v19  ;;  %v853_v29 = vadd.f32 %v852_v13, %v772_v25  ;;  %v861_v2 = vadd.f32 %v860_v60, %v773_v48 }
  0xf8   : > { %v868_v36 = vsel %vm218_vm0, %v778_v51, 0.0  ;;  %v876_v31 = vsel %vm218_vm0, %v779_v45, 0.0  ;;  %v839_v54 = vadd.f32 %v838_v40, %v837_v44  ;;  %v847_v21 = vadd.f32 %v846_v35, %v845_v1 }
  0xf9   : > { %v869_v24 = vadd.f32 %v868_v36, %v774_v46  ;;  %v877_v49 = vadd.f32 %v876_v31, %v775_v16  ;;  %v812_v32 = vmul.f32 0.1, %v787_v50  ;;  %v813_v55 = vmul.f32 0.1, %v795_v17 }
  0xfa   : > { %v854_v39 = vrot.slane %v853_v29, 4  ;;  %v862_v57 = vrot.slane %v861_v2, 4  ;;  %v814_v41 = vmul.f32 0.1, %v803_v28  ;;  %v815_v34 = vmul.f32 0.1, %v811_v58 }
  0xfb   : > { %v870_v61 = vrot.slane %v869_v24, 4  ;;  %v878_v56 = vrot.slane %v877_v49, 4  ;;  %v848_v8 = vmul.f32 0.1, %v823_v5  ;;  %v849_v19 = vmul.f32 0.1, %v831_v6 }
  0xfc   : > { %v855_v63 = vadd.f32 %v854_v39, %v853_v29  ;;  %v863_v11 = vadd.f32 %v862_v57, %v861_v2  ;;  %v850_v4 = vmul.f32 0.1, %v839_v54  ;;  %v851_v42 = vmul.f32 0.1, %v847_v21 }
  0xfd   : > { %v871_v37 = vadd.f32 %v870_v61, %v869_v24  ;;  %v879_v27 = vadd.f32 %v878_v56, %v877_v49  ;;  %v900_v44 = vmul.f32 2.0, %v812_v32  ;;  %v901_v1 = vmul.f32 2.0, %v813_v55 }
  0xfe   : > { %v856_v7 = vrot.slane %v855_v63, 2  ;;  %v864_v12 = vrot.slane %v863_v11, 2  ;;  %v902_v51 = vmul.f32 2.0, %v814_v41  ;;  %v903_v45 = vmul.f32 2.0, %v815_v34 }
  0xff   : > { %v872_v25 = vrot.slane %v871_v37, 2  ;;  %v880_v48 = vrot.slane %v879_v27, 2  ;;  %v888_v40 = vmul.f32 3.0, %v848_v8  ;;  %v889_v35 = vmul.f32 3.0, %v849_v19 }
 0x100   : > { %v857_v46 = vadd.f32 %v856_v7, %v855_v63  ;;  %v865_v16 = vadd.f32 %v864_v12, %v863_v11  ;;  %v890_v13 = vmul.f32 3.0, %v850_v4  ;;  %v891_v60 = vmul.f32 3.0, %v851_v42 }
 0x101   : > { %v873_v50 = vadd.f32 %v872_v25, %v871_v37  ;;  %v881_v17 = vadd.f32 %v880_v48, %v879_v27  ;;  %v904_v5 = vmul.f32 %v900_v44, %v812_v32  ;;  %v905_v6 = vmul.f32 %v901_v1, %v813_v55 }
 0x102   : > { %v858_v28 = vrot.slane %v857_v46, 1  ;;  %v866_v58 = vrot.slane %v865_v16, 1  ;;  %v906_v36 = vmul.f32 %v902_v51, %v814_v41  ;;  %v907_v31 = vmul.f32 %v903_v45, %v815_v34 }
 0x103   : > { %v874_v29 = vrot.slane %v873_v50, 1  ;;  %v882_v2 = vrot.slane %v881_v17, 1  ;;  %v892_v24 = vmul.f32 %v888_v40, %v812_v32  ;;  %v893_v49 = vmul.f32 %v889_v35, %v813_v55 }
 0x104   : > { %v859_v54 = vadd.f32 %v858_v28, %v857_v46  ;;  %v867_v21 = vadd.f32 %v866_v58, %v865_v16  ;;  %v894_v61 = vmul.f32 %v890_v13, %v814_v41  ;;  %v895_v56 = vmul.f32 %v891_v60, %v815_v34 }
 0x105   : > { %v875_v39 = vadd.f32 %v874_v29, %v873_v50  ;;  %v883_v57 = vadd.f32 %v882_v2, %v881_v17  ;;  %v908_v63 = vmul.f32 %v904_v5, %v812_v32  ;;  %v909_v11 = vmul.f32 %v905_v6, %v813_v55 }
 0x106   : > { %v884_v8 = vmul.f32 0.1, %v859_v54  ;;  %v885_v19 = vmul.f32 0.1, %v867_v21  ;;  %v910_v37 = vmul.f32 %v906_v36, %v814_v41  ;;  %v911_v27 = vmul.f32 %v907_v31, %v815_v34 }
 0x107   : > { %v886_v4 = vmul.f32 0.1, %v875_v39  ;;  %v887_v42 = vmul.f32 0.1, %v883_v57  ;;  %v564_v7 = vadd.f32 %v1786_v47, %v548_v59  ;;  %v565_v12 = vadd.f32 %v1789_v20, %v549_v23 }
 0x108   : > { %v896_v44 = vsub.f32 %v884_v8, %v892_v24  ;;  %v897_v1 = vsub.f32 %v885_v19, %v893_v49  ;;  %v566_v32 = vadd.f32 %v1792_v33, %v550_v22  ;;  %v567_v55 = vadd.f32 %v1795_v3, %v551_v38 }
 0x109   : > { %v898_v14 = vsub.f32 %v886_v4, %v894_v61  ;;  %v899_v52 = vsub.f32 %v887_v42, %v895_v56  ;;  %v956_v46 = vlaneseq  ;;  %v962_v35 = vstv %s1076_s18 }
 0x10a   : > { %v912_v47 = vadd.f32 %v908_v63, %v896_v44  ;;  %v913_v59 = vadd.f32 %v909_v11, %v897_v1 }
 0x10b   : > { %v914_v41 = vadd.f32 %v910_v37, %v898_v14  ;;  %v915_v18 = vadd.f32 %v911_v27, %v899_v52  ;;  %v957_v16 = vand.u32 127, %v956_v46 }
 0x10c   : > { %v916_v15 = vmul.f32 %v912_v47, %v564_v7  ;;  %v917_v20 = vmul.f32 %v913_v59, %v565_v12 }
 0x10d   : > { %v918_v23 = vmul.f32 %v914_v41, %v566_v32  ;;  %v919_v34 = vmul.f32 %v915_v18, %v567_v55  ;;  %v958_v40 = vadd.s32 128, %v957_v16  ;;  %v959_v50 = vadd.s32 256, %v957_v16 }
 0x10e   : > { %v924_v25 = vmul.f32 %v916_v15, %v916_v15  ;;  %v925_v48 = vmul.f32 %v917_v20, %v917_v20  ;;  %v960_v17 = vadd.s32 384, %v957_v16  ;;  %v963_v13 = vadd.s32 %v962_v35, %v957_v16 }
 0x10f   : > { %v926_v9 = vmul.f32 %v918_v23, %v918_v23  ;;  %v927_v33 = vmul.f32 %v919_v34, %v919_v34  ;;  %v964_v60 = vadd.s32 %v962_v35, %v958_v40  ;;  %v965_v28 = vadd.s32 %v962_v35, %v959_v50 }
 0x110   : > { %v928_v53 = vmul.f32 0.0069444445, %v924_v25  ;;  %v929_v22 = vmul.f32 0.0069444445, %v925_v48  ;;  %vm967_vm1 = vcmp.lt.s32.totalorder %v963_v13, 1000 }
 0x111   : > { %v930_v26 = vmul.f32 0.0069444445, %v926_v9  ;;  %v931_v30 = vmul.f32 0.0069444445, %v927_v33  ;;  %vm968_vm2 = vcmp.lt.s32.totalorder %v964_v60, 1000  ;;  %vm969_vm3 = vcmp.lt.s32.totalorder %v965_v28, 1000 }
 0x112   : > { %v940_v3 = vmul.f32 %v1895_v10, %v928_v53  ;;  %v941_v38 = vmul.f32 %v1897_v43, %v929_v22 }
 0x113   : > { %v942_v51 = vmul.f32 %v1899_v62, %v930_v26  ;;  %v943_v45 = vmul.f32 %v1903_v0, %v931_v30  ;;  %v966_v62 = vadd.s32 %v962_v35, %v960_v17 }
 0x114   : > { %1152 = vlog2.f32 %v940_v3 }
 0x115   : > { %1154 = vlog2.f32 %v941_v38  ;;  %vm970_vm4 = vcmp.lt.s32.totalorder %v966_v62, 1000 }
 0x116   : > { %1156 = vlog2.f32 %v942_v51 }
 0x117   : > { %1158 = vlog2.f32 %v943_v45 }
 0x121   : > { %v1153_v10 = vpop.eup %1152 }
 0x122   : > { %v1155_v43 = vpop.eup %1154  ;;  %v945_v58 = vmul.f32 0.6931472, %v1153_v10 }
 0x123   : > { %v1157_v5 = vpop.eup %1156  ;;  %v947_v0 = vmul.f32 0.6931472, %v1155_v43 }
 0x124   : > { %v1159_v6 = vpop.eup %1158  ;;  %v949_v29 = vmul.f32 0.6931472, %v1157_v5  ;;  %v952_v2 = vmul.f32 -0.5, %v945_v58 }
 0x125   : > { %v951_v36 = vmul.f32 0.6931472, %v1159_v6  ;;  %v953_v31 = vmul.f32 -0.5, %v947_v0 }
 0x126   : > { %v954_v54 = vmul.f32 -0.5, %v949_v29  ;;  %v971_v21 = vsel %vm967_vm1, %v952_v2, 0.0 }
 0x127   : > { %v955_v24 = vmul.f32 -0.5, %v951_v36  ;;  %v972_v49 = vsel %vm968_vm2, %v953_v31, 0.0 }
 0x128   : > { %v973_v39 = vsel %vm969_vm3, %v954_v54, 0.0  ;;  %v975_v57 = vadd.f32 %v972_v49, %v971_v21 }
 0x129   : > { %v974_v61 = vsel %vm970_vm4, %v955_v24, 0.0 }
 0x12a   : > { %v976_v56 = vadd.f32 %v975_v57, %v973_v39 }
 0x12c   : > { %v977_v8 = vadd.f32 %v976_v56, %v974_v61 }
 0x12e   : > { %978 = vadd.xlane.f32.xlu0 %v977_v8 }
 0x1b7   : > { %v979_v19 = vpop.xlane.xlu0 %978 }
 0x1b8   : > { %981 = vst.msk [vmem:[%s201_s23] sm:$0x1] %vm980_vm5, %v979_v19 }
 0x1b9 PF: > { %p15_p10 = scmp.ge.s32.totalorder %s1298_s14, 4   ;;  %s1992_s9 = smov %s1246_s10 }
 0x1ba   : > { %s1993_s10 = smov %s1250_s11  ;;  %s1994_s11 = smov %s1308_s17 }
 0x1bb   : > { %s1995_s12 = smov %s1298_s14  ;;  %17 = sbr.rel (!%p15_p10) target bundleno = 5 (0x5), region = 81 }
 0x1c0   :  { %999 = vsyncpa [#allocation3], 1 }
 0x1c1   :  { %1001 = vsyncpa [#allocation3 + $0x1], 1 }
 0x1c2   :  { %1002 = vsyncpa [#allocation5], 1 }
 0x1c3   :  { %1004 = vsyncpa [#allocation5 + $0x1], 1 }

</bundles_post_ra>
